<compile_context>
chip_gen: v6e
topology: v6e:2x2x1
jax: 0.10.0
libtpu: 0.0.40
codegen_flags: <defaults>
</compile_context>

<pallas_src>
import functools

import jax
import jax.numpy as jnp
from jax.experimental import pallas as pl
from jax.experimental.pallas import tpu as pltpu


# ----------------------------------------------------------------------------
# Fused Pallas kernel: whole LTL-tree forward + heads in one call
# ----------------------------------------------------------------------------

def _vmem():
    return pl.BlockSpec(memory_space=pltpu.MemorySpace.VMEM)


_PARAM_ORDER = (
    # fused leaf ('a','b') GRU + out_linear
    "wl_obs", "wl_par", "wl_h", "bl_i", "bl_h", "wl_out", "bl_out",
    # '&' op: combine_state + GRU + out_linear
    "w_comb", "b_comb",
    "wo_obs", "wo_state", "wo_par", "wo_h", "bo_i", "bo_h", "wo_out", "bo_out",
    # fused critic+actor head
    "w_head", "b_head",
)


def _fused_tree_kernel(
        # activations / state
        obs_ref, masks_ref,
        h_leaf_ref, par_leaf_ref,            # (B,2H), (B,2S)  [a | b]
        h_op_ref, par_op_ref,                # (B,H),  (B,S)
        # fused leaf weights (both leaves)
        wl_obs_ref, wl_par_ref, wl_h_ref,    # (D,6H) (2S,6H) (2H,6H)
        bl_i_ref, bl_h_ref,                  # (1,6H) (1,6H)
        wl_out_ref, bl_out_ref,              # (2H,2S) (1,2S)
        # '&' op weights
        w_comb_ref, b_comb_ref,              # (2S,S) (1,S)
        wo_obs_ref, wo_state_ref, wo_par_ref, wo_h_ref,  # (D,3H)(S,3H)(S,3H)(H,3H)
        bo_i_ref, bo_h_ref,                  # (1,3H) (1,3H)
        wo_out_ref, bo_out_ref,              # (H,S) (1,S)
        # fused critic+actor head
        w_head_ref, b_head_ref,              # (H,1+A) (1,1+A)
        # outputs
        head_ref, h_op_new_ref, h_leaf_new_ref, out_op_ref,
        *, H):
    bf16 = jnp.bfloat16

    def mm(x, w_ref):
        # MXU-native: bf16 operands, f32 accumulation.
        return jnp.dot(x.astype(bf16), w_ref[...],
                       preferred_element_type=jnp.float32)

    m = masks_ref[...]                      # (B,1) per-row mask
    obs_m = obs_ref[...] * m                # masked once, reused by all nodes
    h_leaf = h_leaf_ref[...] * m            # (B,2H)
    par_leaf = par_leaf_ref[...] * m        # (B,2S)

    # ---- leaves 'a' and 'b': one fused GRU step for both --------------------
    # gate column layout: [r_a r_b | z_a z_b | n_a n_b], each block H wide
    xg = mm(obs_m, wl_obs_ref) + mm(par_leaf, wl_par_ref) + bl_i_ref[...]
    hg = mm(h_leaf, wl_h_ref) + bl_h_ref[...]
    r = jax.nn.sigmoid(xg[:, 0:2 * H] + hg[:, 0:2 * H])
    z = jax.nn.sigmoid(xg[:, 2 * H:4 * H] + hg[:, 2 * H:4 * H])
    n = jnp.tanh(xg[:, 4 * H:6 * H] + r * hg[:, 4 * H:6 * H])
    h_leaf_new = (1.0 - z) * n + z * h_leaf                     # (B, 2H)
    out_leaves = mm(h_leaf_new, wl_out_ref) + bl_out_ref[...]   # (B, 2S) = [out_a|out_b]

    # ---- '&' operator node ---------------------------------------------------
    in_state = mm(out_leaves, w_comb_ref) + b_comb_ref[...]     # combine_state
    h_op = h_op_ref[...] * m
    par_op = par_op_ref[...] * m
    xg_o = (mm(obs_m, wo_obs_ref) + mm(in_state * m, wo_state_ref)
            + mm(par_op, wo_par_ref) + bo_i_ref[...])
    hg_o = mm(h_op, wo_h_ref) + bo_h_ref[...]
    r_o = jax.nn.sigmoid(xg_o[:, 0:H] + hg_o[:, 0:H])
    z_o = jax.nn.sigmoid(xg_o[:, H:2 * H] + hg_o[:, H:2 * H])
    n_o = jnp.tanh(xg_o[:, 2 * H:3 * H] + r_o * hg_o[:, 2 * H:3 * H])
    h_op_new = (1.0 - z_o) * n_o + z_o * h_op                   # rnn_out / x
    out_op = mm(h_op_new, wo_out_ref) + bo_out_ref[...]         # out_state of root

    # ---- fused critic + actor heads on x = rnn_out ---------------------------
    head = mm(h_op_new, w_head_ref) + b_head_ref[...]           # (B, 1+A)

    head_ref[...] = head
    h_op_new_ref[...] = h_op_new
    h_leaf_new_ref[...] = h_leaf_new
    out_op_ref[...] = out_op


def ltl_actor_critic_forward(packed, obs, masks, state, *, H, S, A):
    """One LTLActorCritic act()-style step, fully fused in one pallas_call."""
    B = obs.shape[0]
    kernel = functools.partial(_fused_tree_kernel, H=H)
    head, h_op_new, h_leaf_new, out_op = pl.pallas_call(
        kernel,
        out_shape=(
            jax.ShapeDtypeStruct((B, 1 + A), jnp.float32),   # [value | logits]
            jax.ShapeDtypeStruct((B, H), jnp.float32),       # x / new root hidden
            jax.ShapeDtypeStruct((B, 2 * H), jnp.float32),   # new leaf hiddens
            jax.ShapeDtypeStruct((B, S), jnp.float32),       # root out_state
        ),
        in_specs=[_vmem()] * (6 + len(_PARAM_ORDER)),
        out_specs=(_vmem(), _vmem(), _vmem(), _vmem()),
        # TODO(synk): at large batch, add a batch grid axis with
        # dimension_semantics=("parallel",) so v7x's two TensorCores split it,
        # and switch activations to batch-tiled BlockSpecs.
    )(obs, masks, state["h_leaf"], state["par_leaf"], state["h_op"],
      state["par_op"], *[packed[k] for k in _PARAM_ORDER])

    value = head[:, :1]
    logits = head[:, 1:]
    x = h_op_new
    new_state = {
        "h_leaf": h_leaf_new,
        "par_leaf": jnp.concatenate([out_op, out_op], axis=1),  # op's out_state -> both children
        "h_op": h_op_new,
        "par_op": state["par_op"],                               # root has no parent
    }
    # TODO(synk): Categorical sampling / log_probs / entropy not implemented;
    # the actor head returns raw logits only.
    return value, logits, x, new_state


# ----------------------------------------------------------------------------
# Parameter init (natural layout) and packing into the fused layout
# ----------------------------------------------------------------------------

def init_linear_params(key, fan_in, fan_out, scale=0.1):
    kw, kb = jax.random.split(key)
    w = jax.random.normal(kw, (fan_in, fan_out), jnp.float32) * scale
    b = jax.random.normal(kb, (1, fan_out), jnp.float32) * scale
    return w, b


def init_gru_params(key, in_size, hidden, scale=0.1):
    # TODO(synk): PyTorch uses orthogonal init for GRU weights; scaled normal here.
    k_ih, k_hh = jax.random.split(key)
    w_ih = jax.random.normal(k_ih, (in_size, 3 * hidden), jnp.float32) * scale
    w_hh = jax.random.normal(k_hh, (hidden, 3 * hidden), jnp.float32) * scale
    b_ih = jnp.zeros((1, 3 * hidden), jnp.float32)   # constant 0, as in the module
    b_hh = jnp.zeros((1, 3 * hidden), jnp.float32)
    return w_ih, w_hh, b_ih, b_hh


def init_leaf(key, D, S, H):
    k_rnn, k_out = jax.random.split(key)
    w_ih, w_hh, b_ih, b_hh = init_gru_params(k_rnn, D + S, H)
    w_out, b_out = init_linear_params(k_out, H, S)
    return {"w_ih": w_ih, "w_hh": w_hh, "b_ih": b_ih, "b_hh": b_hh,
            "w_out": w_out, "b_out": b_out}


def init_op(key, D, S, H):
    k_rnn, k_out, k_comb = jax.random.split(key, 3)
    w_ih, w_hh, b_ih, b_hh = init_gru_params(k_rnn, D + 2 * S, H)
    w_out, b_out = init_linear_params(k_out, H, S)
    w_comb, b_comb = init_linear_params(k_comb, 2 * S, S)
    return {"w_ih": w_ih, "w_hh": w_hh, "b_ih": b_ih, "b_hh": b_hh,
            "w_out": w_out, "b_out": b_out, "w_comb": w_comb, "b_comb": b_comb}


def pack_params(nat, D, S, H):
    """Pack per-node params into the fused layout consumed by the kernel."""
    pa, pb, po = nat["a"], nat["b"], nat["&"]

    def gate(w, i):
        return w[:, i * H:(i + 1) * H]

    def interleave(wa, wb):
        # (rows, 3H) x2 with [r|z|n] -> (rows, 6H) with [r_a r_b z_a z_b n_a n_b]
        return jnp.concatenate([gate(wa, 0), gate(wb, 0),
                                gate(wa, 1), gate(wb, 1),
                                gate(wa, 2), gate(wb, 2)], axis=1)

    def bdiag(a, b):
        za = jnp.zeros((a.shape[0], b.shape[1]), a.dtype)
        zb = jnp.zeros((b.shape[0], a.shape[1]), a.dtype)
        return jnp.concatenate([jnp.concatenate([a, za], axis=1),
                                jnp.concatenate([zb, b], axis=1)], axis=0)

    wl_obs = interleave(pa["w_ih"][:D], pb["w_ih"][:D])                 # (D, 6H)
    wl_par = jnp.concatenate(
        [bdiag(gate(pa["w_ih"][D:], g), gate(pb["w_ih"][D:], g)) for g in range(3)],
        axis=1)                                                         # (2S, 6H)
    wl_h = jnp.concatenate(
        [bdiag(gate(pa["w_hh"], g), gate(pb["w_hh"], g)) for g in range(3)],
        axis=1)                                                         # (2H, 6H)
    bl_i = interleave(pa["b_ih"], pb["b_ih"])                           # (1, 6H)
    bl_h = interleave(pa["b_hh"], pb["b_hh"])
    wl_out = bdiag(pa["w_out"], pb["w_out"])                            # (2H, 2S)
    bl_out = jnp.concatenate([pa["b_out"], pb["b_out"]], axis=1)        # (1, 2S)

    wo_ih = po["w_ih"]   # rows ordered [obs | in_state | parent] (D + 2S, 3H)
    packed = {
        "wl_obs": wl_obs, "wl_par": wl_par, "wl_h": wl_h,
        "bl_i": bl_i, "bl_h": bl_h, "wl_out": wl_out, "bl_out": bl_out,
        "w_comb": po["w_comb"], "b_comb": po["b_comb"],
        "wo_obs": wo_ih[:D], "wo_state": wo_ih[D:D + S], "wo_par": wo_ih[D + S:],
        "wo_h": po["w_hh"], "bo_i": po["b_ih"], "bo_h": po["b_hh"],
        "wo_out": po["w_out"], "bo_out": po["b_out"],
        "w_head": jnp.concatenate([nat["critic_w"], nat["actor_w"]], axis=1),
        "b_head": jnp.concatenate([nat["critic_b"], nat["actor_b"]], axis=1),
    }
    # Weight matrices bf16 (MXU-native, half the DMA bytes); biases stay f32.
    return {k: (v.astype(jnp.bfloat16) if k.startswith("w") else v)
            for k, v in packed.items()}


# ----------------------------------------------------------------------------
# Pure-JAX f32 reference (mirrors BasePolicy / LTLPolicy for this config)
# ----------------------------------------------------------------------------

def _reference_forward(nat, obs, masks, *, D, S, H):
    hi = jax.lax.Precision.HIGHEST
    dot = lambda a, b: jnp.dot(a, b, precision=hi)
    B = obs.shape[0]
    zeros_s = jnp.zeros((B, S), jnp.float32)
    zeros_h = jnp.zeros((B, H), jnp.float32)

    def gate(w, i):
        return w[:, i * H:(i + 1) * H]

    def node(p, child_states, parent, hidden):
        if child_states:
            cs = jnp.concatenate(child_states, axis=1)
            in_state = dot(cs, p["w_comb"]) + p["b_comb"]
            rnn_in = jnp.concatenate([obs, in_state, parent], axis=1)
        else:
            rnn_in = jnp.concatenate([obs, parent], axis=1)
        x = rnn_in * masks
        h = hidden * masks
        w_ih, w_hh, b_ih, b_hh = p["w_ih"], p["w_hh"], p["b_ih"], p["b_hh"]
        r = jax.nn.sigmoid(dot(x, gate(w_ih, 0)) + gate(b_ih, 0)
                           + dot(h, gate(w_hh, 0)) + gate(b_hh, 0))
        z = jax.nn.sigmoid(dot(x, gate(w_ih, 1)) + gate(b_ih, 1)
                           + dot(h, gate(w_hh, 1)) + gate(b_hh, 1))
        n = jnp.tanh(dot(x, gate(w_ih, 2)) + gate(b_ih, 2)
                     + r * (dot(h, gate(w_hh, 2)) + gate(b_hh, 2)))
        h_new = (1.0 - z) * n + z * h
        out_state = dot(h_new, p["w_out"]) + p["b_out"]
        return h_new, out_state

    h_a, out_a = node(nat["a"], [], zeros_s, zeros_h)
    h_b, out_b = node(nat["b"], [], zeros_s, zeros_h)
    h_op, out_op = node(nat["&"], [out_a, out_b], zeros_s, zeros_h)
    x = h_op
    value = dot(x, nat["critic_w"]) + nat["critic_b"]
    logits = dot(x, nat["actor_w"]) + nat["actor_b"]
    return value, logits, x, jnp.concatenate([h_a, h_b], axis=1), out_op


# ----------------------------------------------------------------------------
# Demo
# ----------------------------------------------------------------------------

if __name__ == "__main__":
    B, D, H, S, A = 2, 16, 32, 8, 4   # batch, obs_dim, rnn_size, output_state_size, n_actions

    key = jax.random.PRNGKey(0)
    k_obs, k_a, k_b, k_op, k_cr, k_ac = jax.random.split(key, 6)

    obs = jax.random.normal(k_obs, (B, D), jnp.float32)
    masks = jnp.ones((B, 1), jnp.float32)

    # LTL tree (& a b) — natural per-node parameters, then packed/fused.
    nat = {
        "a": init_leaf(k_a, D, S, H),
        "b": init_leaf(k_b, D, S, H),
        "&": init_op(k_op, D, S, H),
    }
    nat["critic_w"], nat["critic_b"] = init_linear_params(k_cr, H, 1)
    nat["actor_w"], nat["actor_b"] = init_linear_params(k_ac, H, A)
    packed = pack_params(nat, D, S, H)

    # First step after reset(): all previous hidden / parent states are zeros.
    state0 = {
        "h_leaf": jnp.zeros((B, 2 * H), jnp.float32),
        "par_leaf": jnp.zeros((B, 2 * S), jnp.float32),
        "h_op": jnp.zeros((B, H), jnp.float32),
        "par_op": jnp.zeros((B, S), jnp.float32),
    }

    value, logits, x, new_state = ltl_actor_critic_forward(
        packed, obs, masks, state0, H=H, S=S, A=A)
    jax.block_until_ready((value, logits, x))

    assert value.shape == (B, 1)
    assert logits.shape == (B, A)
    assert x.shape == (B, H)
    assert bool(jnp.all(jnp.isfinite(value)))
    assert bool(jnp.all(jnp.isfinite(logits)))
    assert bool(jnp.all(jnp.isfinite(x)))

    # Check against a pure-JAX f32 reference (bf16 matmul operands in-kernel
    # => loose tolerance; packing bugs would show up as O(0.1) errors).
    ref_value, ref_logits, ref_x, ref_h_leaf, ref_out_op = _reference_forward(
        nat, obs, masks, D=D, S=S, H=H)
    tol = dict(atol=2e-2, rtol=2e-2)
    assert bool(jnp.allclose(value, ref_value, **tol))
    assert bool(jnp.allclose(logits, ref_logits, **tol))
    assert bool(jnp.allclose(x, ref_x, **tol))
    assert bool(jnp.allclose(new_state["h_leaf"], ref_h_leaf, **tol))
    assert bool(jnp.allclose(new_state["par_leaf"][:, :S], ref_out_op, **tol))

    print("KERNEL_OK")
</pallas_src>

<mosaic_0001>
module attributes {stable_mosaic.version = 11 : i64} {
  func.func @_fused_tree_kernel(%arg0: memref<2x16xf32, #tpu.memory_space<vmem>>, %arg1: memref<2x1xf32, #tpu.memory_space<vmem>>, %arg2: memref<2x64xf32, #tpu.memory_space<vmem>>, %arg3: memref<2x16xf32, #tpu.memory_space<vmem>>, %arg4: memref<2x32xf32, #tpu.memory_space<vmem>>, %arg5: memref<2x8xf32, #tpu.memory_space<vmem>>, %arg6: memref<16x192xbf16, #tpu.memory_space<vmem>>, %arg7: memref<16x192xbf16, #tpu.memory_space<vmem>>, %arg8: memref<64x192xbf16, #tpu.memory_space<vmem>>, %arg9: memref<1x192xf32, #tpu.memory_space<vmem>>, %arg10: memref<1x192xf32, #tpu.memory_space<vmem>>, %arg11: memref<64x16xbf16, #tpu.memory_space<vmem>>, %arg12: memref<1x16xf32, #tpu.memory_space<vmem>>, %arg13: memref<16x8xbf16, #tpu.memory_space<vmem>>, %arg14: memref<1x8xf32, #tpu.memory_space<vmem>>, %arg15: memref<16x96xbf16, #tpu.memory_space<vmem>>, %arg16: memref<8x96xbf16, #tpu.memory_space<vmem>>, %arg17: memref<8x96xbf16, #tpu.memory_space<vmem>>, %arg18: memref<32x96xbf16, #tpu.memory_space<vmem>>, %arg19: memref<1x96xf32, #tpu.memory_space<vmem>>, %arg20: memref<1x96xf32, #tpu.memory_space<vmem>>, %arg21: memref<32x8xbf16, #tpu.memory_space<vmem>>, %arg22: memref<1x8xf32, #tpu.memory_space<vmem>>, %arg23: memref<32x5xbf16, #tpu.memory_space<vmem>>, %arg24: memref<1x5xf32, #tpu.memory_space<vmem>>, %arg25: memref<2x5xf32, #tpu.memory_space<vmem>>, %arg26: memref<2x32xf32, #tpu.memory_space<vmem>>, %arg27: memref<2x64xf32, #tpu.memory_space<vmem>>, %arg28: memref<2x8xf32, #tpu.memory_space<vmem>>) attributes {dimension_semantics = [], scalar_prefetch = 0 : i64, scratch_operands = 0 : i64, tpu.core_type = #tpu.core_type<tc>} {
    %c0 = arith.constant 0 : index
    %c0_0 = arith.constant 0 : index
    %0 = vector.load %arg1[%c0, %c0_0] : memref<2x1xf32, #tpu.memory_space<vmem>>, vector<2x1xf32>
    %c0_1 = arith.constant 0 : index
    %c0_2 = arith.constant 0 : index
    %1 = vector.load %arg0[%c0_1, %c0_2] : memref<2x16xf32, #tpu.memory_space<vmem>>, vector<2x16xf32>
    %2 = vector.broadcast %0 : vector<2x1xf32> to vector<2x16xf32>
    %3 = arith.mulf %1, %2 : vector<2x16xf32>
    %c0_3 = arith.constant 0 : index
    %c0_4 = arith.constant 0 : index
    %4 = vector.load %arg2[%c0_3, %c0_4] : memref<2x64xf32, #tpu.memory_space<vmem>>, vector<2x64xf32>
    %5 = vector.broadcast %0 : vector<2x1xf32> to vector<2x64xf32>
    %6 = arith.mulf %4, %5 : vector<2x64xf32>
    %c0_5 = arith.constant 0 : index
    %c0_6 = arith.constant 0 : index
    %7 = vector.load %arg3[%c0_5, %c0_6] : memref<2x16xf32, #tpu.memory_space<vmem>>, vector<2x16xf32>
    %8 = vector.broadcast %0 : vector<2x1xf32> to vector<2x16xf32>
    %9 = arith.mulf %7, %8 : vector<2x16xf32>
    %10 = arith.truncf %3 : vector<2x16xf32> to vector<2x16xbf16>
    %c0_7 = arith.constant 0 : index
    %c0_8 = arith.constant 0 : index
    %11 = vector.load %arg6[%c0_7, %c0_8] : memref<16x192xbf16, #tpu.memory_space<vmem>>, vector<16x192xbf16>
    %cst = arith.constant dense<0.000000e+00> : vector<2x192xf32>
    %12 = tpu.matmul %10, %11, %cst {dimension_numbers = #tpu.dot_dimension_numbers<[1], [0], [0], [1], [0, 0, 1, 1], [], []>} : vector<2x16xbf16>, vector<16x192xbf16>, vector<2x192xf32> -> vector<2x192xf32>
    %13 = arith.truncf %9 : vector<2x16xf32> to vector<2x16xbf16>
    %c0_9 = arith.constant 0 : index
    %c0_10 = arith.constant 0 : index
    %14 = vector.load %arg7[%c0_9, %c0_10] : memref<16x192xbf16, #tpu.memory_space<vmem>>, vector<16x192xbf16>
    %cst_11 = arith.constant dense<0.000000e+00> : vector<2x192xf32>
    %15 = tpu.matmul %13, %14, %cst_11 {dimension_numbers = #tpu.dot_dimension_numbers<[1], [0], [0], [1], [0, 0, 1, 1], [], []>} : vector<2x16xbf16>, vector<16x192xbf16>, vector<2x192xf32> -> vector<2x192xf32>
    %16 = arith.addf %12, %15 : vector<2x192xf32>
    %c0_12 = arith.constant 0 : index
    %c0_13 = arith.constant 0 : index
    %17 = vector.load %arg9[%c0_12, %c0_13] : memref<1x192xf32, #tpu.memory_space<vmem>>, vector<1x192xf32>
    %18 = vector.broadcast %17 : vector<1x192xf32> to vector<2x192xf32>
    %19 = arith.addf %16, %18 : vector<2x192xf32>
    %20 = arith.truncf %6 : vector<2x64xf32> to vector<2x64xbf16>
    %c0_14 = arith.constant 0 : index
    %c0_15 = arith.constant 0 : index
    %21 = vector.load %arg8[%c0_14, %c0_15] : memref<64x192xbf16, #tpu.memory_space<vmem>>, vector<64x192xbf16>
    %cst_16 = arith.constant dense<0.000000e+00> : vector<2x192xf32>
    %22 = tpu.matmul %20, %21, %cst_16 {dimension_numbers = #tpu.dot_dimension_numbers<[1], [0], [0], [1], [0, 0, 1, 1], [], []>} : vector<2x64xbf16>, vector<64x192xbf16>, vector<2x192xf32> -> vector<2x192xf32>
    %c0_17 = arith.constant 0 : index
    %c0_18 = arith.constant 0 : index
    %23 = vector.load %arg10[%c0_17, %c0_18] : memref<1x192xf32, #tpu.memory_space<vmem>>, vector<1x192xf32>
    %24 = vector.broadcast %23 : vector<1x192xf32> to vector<2x192xf32>
    %25 = arith.addf %22, %24 : vector<2x192xf32>
    %26 = vector.extract_strided_slice %19 {offsets = [0, 0], sizes = [2, 64], strides = [1, 1]} : vector<2x192xf32> to vector<2x64xf32>
    %27 = vector.extract_strided_slice %25 {offsets = [0, 0], sizes = [2, 64], strides = [1, 1]} : vector<2x192xf32> to vector<2x64xf32>
    %28 = arith.addf %26, %27 : vector<2x64xf32>
    %29 = arith.negf %28 : vector<2x64xf32>
    %30 = math.exp %29 : vector<2x64xf32>
    %cst_19 = arith.constant 1.000000e+00 : f32
    %31 = vector.broadcast %cst_19 : f32 to vector<2x64xf32>
    %32 = arith.addf %31, %30 : vector<2x64xf32>
    %33 = arith.divf %31, %32 : vector<2x64xf32>
    %34 = vector.extract_strided_slice %19 {offsets = [0, 64], sizes = [2, 64], strides = [1, 1]} : vector<2x192xf32> to vector<2x64xf32>
    %35 = vector.extract_strided_slice %25 {offsets = [0, 64], sizes = [2, 64], strides = [1, 1]} : vector<2x192xf32> to vector<2x64xf32>
    %36 = arith.addf %34, %35 : vector<2x64xf32>
    %37 = arith.negf %36 : vector<2x64xf32>
    %38 = math.exp %37 : vector<2x64xf32>
    %cst_20 = arith.constant 1.000000e+00 : f32
    %39 = vector.broadcast %cst_20 : f32 to vector<2x64xf32>
    %40 = arith.addf %39, %38 : vector<2x64xf32>
    %41 = arith.divf %39, %40 : vector<2x64xf32>
    %42 = vector.extract_strided_slice %19 {offsets = [0, 128], sizes = [2, 64], strides = [1, 1]} : vector<2x192xf32> to vector<2x64xf32>
    %43 = vector.extract_strided_slice %25 {offsets = [0, 128], sizes = [2, 64], strides = [1, 1]} : vector<2x192xf32> to vector<2x64xf32>
    %44 = arith.mulf %33, %43 : vector<2x64xf32>
    %45 = arith.addf %42, %44 : vector<2x64xf32>
    %46 = math.tanh %45 : vector<2x64xf32>
    %cst_21 = arith.constant 1.000000e+00 : f32
    %47 = vector.broadcast %cst_21 : f32 to vector<2x64xf32>
    %48 = arith.subf %47, %41 : vector<2x64xf32>
    %49 = arith.mulf %48, %46 : vector<2x64xf32>
    %50 = arith.mulf %41, %6 : vector<2x64xf32>
    %51 = arith.addf %49, %50 : vector<2x64xf32>
    %52 = arith.truncf %51 : vector<2x64xf32> to vector<2x64xbf16>
    %c0_22 = arith.constant 0 : index
    %c0_23 = arith.constant 0 : index
    %53 = vector.load %arg11[%c0_22, %c0_23] : memref<64x16xbf16, #tpu.memory_space<vmem>>, vector<64x16xbf16>
    %cst_24 = arith.constant dense<0.000000e+00> : vector<2x16xf32>
    %54 = tpu.matmul %52, %53, %cst_24 {dimension_numbers = #tpu.dot_dimension_numbers<[1], [0], [0], [1], [0, 0, 1, 1], [], []>} : vector<2x64xbf16>, vector<64x16xbf16>, vector<2x16xf32> -> vector<2x16xf32>
    %c0_25 = arith.constant 0 : index
    %c0_26 = arith.constant 0 : index
    %55 = vector.load %arg12[%c0_25, %c0_26] : memref<1x16xf32, #tpu.memory_space<vmem>>, vector<1x16xf32>
    %56 = vector.broadcast %55 : vector<1x16xf32> to vector<2x16xf32>
    %57 = arith.addf %54, %56 : vector<2x16xf32>
    %58 = arith.truncf %57 : vector<2x16xf32> to vector<2x16xbf16>
    %c0_27 = arith.constant 0 : index
    %c0_28 = arith.constant 0 : index
    %59 = vector.load %arg13[%c0_27, %c0_28] : memref<16x8xbf16, #tpu.memory_space<vmem>>, vector<16x8xbf16>
    %cst_29 = arith.constant dense<0.000000e+00> : vector<2x8xf32>
    %60 = tpu.matmul %58, %59, %cst_29 {dimension_numbers = #tpu.dot_dimension_numbers<[1], [0], [0], [1], [0, 0, 1, 1], [], []>} : vector<2x16xbf16>, vector<16x8xbf16>, vector<2x8xf32> -> vector<2x8xf32>
    %c0_30 = arith.constant 0 : index
    %c0_31 = arith.constant 0 : index
    %61 = vector.load %arg14[%c0_30, %c0_31] : memref<1x8xf32, #tpu.memory_space<vmem>>, vector<1x8xf32>
    %62 = vector.broadcast %61 : vector<1x8xf32> to vector<2x8xf32>
    %63 = arith.addf %60, %62 : vector<2x8xf32>
    %c0_32 = arith.constant 0 : index
    %c0_33 = arith.constant 0 : index
    %64 = vector.load %arg4[%c0_32, %c0_33] : memref<2x32xf32, #tpu.memory_space<vmem>>, vector<2x32xf32>
    %65 = vector.broadcast %0 : vector<2x1xf32> to vector<2x32xf32>
    %66 = arith.mulf %64, %65 : vector<2x32xf32>
    %c0_34 = arith.constant 0 : index
    %c0_35 = arith.constant 0 : index
    %67 = vector.load %arg5[%c0_34, %c0_35] : memref<2x8xf32, #tpu.memory_space<vmem>>, vector<2x8xf32>
    %68 = vector.broadcast %0 : vector<2x1xf32> to vector<2x8xf32>
    %69 = arith.mulf %67, %68 : vector<2x8xf32>
    %70 = arith.truncf %3 : vector<2x16xf32> to vector<2x16xbf16>
    %c0_36 = arith.constant 0 : index
    %c0_37 = arith.constant 0 : index
    %71 = vector.load %arg15[%c0_36, %c0_37] : memref<16x96xbf16, #tpu.memory_space<vmem>>, vector<16x96xbf16>
    %cst_38 = arith.constant dense<0.000000e+00> : vector<2x96xf32>
    %72 = tpu.matmul %70, %71, %cst_38 {dimension_numbers = #tpu.dot_dimension_numbers<[1], [0], [0], [1], [0, 0, 1, 1], [], []>} : vector<2x16xbf16>, vector<16x96xbf16>, vector<2x96xf32> -> vector<2x96xf32>
    %73 = vector.broadcast %0 : vector<2x1xf32> to vector<2x8xf32>
    %74 = arith.mulf %63, %73 : vector<2x8xf32>
    %75 = arith.truncf %74 : vector<2x8xf32> to vector<2x8xbf16>
    %c0_39 = arith.constant 0 : index
    %c0_40 = arith.constant 0 : index
    %76 = vector.load %arg16[%c0_39, %c0_40] : memref<8x96xbf16, #tpu.memory_space<vmem>>, vector<8x96xbf16>
    %cst_41 = arith.constant dense<0.000000e+00> : vector<2x96xf32>
    %77 = tpu.matmul %75, %76, %cst_41 {dimension_numbers = #tpu.dot_dimension_numbers<[1], [0], [0], [1], [0, 0, 1, 1], [], []>} : vector<2x8xbf16>, vector<8x96xbf16>, vector<2x96xf32> -> vector<2x96xf32>
    %78 = arith.addf %72, %77 : vector<2x96xf32>
    %79 = arith.truncf %69 : vector<2x8xf32> to vector<2x8xbf16>
    %c0_42 = arith.constant 0 : index
    %c0_43 = arith.constant 0 : index
    %80 = vector.load %arg17[%c0_42, %c0_43] : memref<8x96xbf16, #tpu.memory_space<vmem>>, vector<8x96xbf16>
    %cst_44 = arith.constant dense<0.000000e+00> : vector<2x96xf32>
    %81 = tpu.matmul %79, %80, %cst_44 {dimension_numbers = #tpu.dot_dimension_numbers<[1], [0], [0], [1], [0, 0, 1, 1], [], []>} : vector<2x8xbf16>, vector<8x96xbf16>, vector<2x96xf32> -> vector<2x96xf32>
    %82 = arith.addf %78, %81 : vector<2x96xf32>
    %c0_45 = arith.constant 0 : index
    %c0_46 = arith.constant 0 : index
    %83 = vector.load %arg19[%c0_45, %c0_46] : memref<1x96xf32, #tpu.memory_space<vmem>>, vector<1x96xf32>
    %84 = vector.broadcast %83 : vector<1x96xf32> to vector<2x96xf32>
    %85 = arith.addf %82, %84 : vector<2x96xf32>
    %86 = arith.truncf %66 : vector<2x32xf32> to vector<2x32xbf16>
    %c0_47 = arith.constant 0 : index
    %c0_48 = arith.constant 0 : index
    %87 = vector.load %arg18[%c0_47, %c0_48] : memref<32x96xbf16, #tpu.memory_space<vmem>>, vector<32x96xbf16>
    %cst_49 = arith.constant dense<0.000000e+00> : vector<2x96xf32>
    %88 = tpu.matmul %86, %87, %cst_49 {dimension_numbers = #tpu.dot_dimension_numbers<[1], [0], [0], [1], [0, 0, 1, 1], [], []>} : vector<2x32xbf16>, vector<32x96xbf16>, vector<2x96xf32> -> vector<2x96xf32>
    %c0_50 = arith.constant 0 : index
    %c0_51 = arith.constant 0 : index
    %89 = vector.load %arg20[%c0_50, %c0_51] : memref<1x96xf32, #tpu.memory_space<vmem>>, vector<1x96xf32>
    %90 = vector.broadcast %89 : vector<1x96xf32> to vector<2x96xf32>
    %91 = arith.addf %88, %90 : vector<2x96xf32>
    %92 = vector.extract_strided_slice %85 {offsets = [0, 0], sizes = [2, 32], strides = [1, 1]} : vector<2x96xf32> to vector<2x32xf32>
    %93 = vector.extract_strided_slice %91 {offsets = [0, 0], sizes = [2, 32], strides = [1, 1]} : vector<2x96xf32> to vector<2x32xf32>
    %94 = arith.addf %92, %93 : vector<2x32xf32>
    %95 = arith.negf %94 : vector<2x32xf32>
    %96 = math.exp %95 : vector<2x32xf32>
    %cst_52 = arith.constant 1.000000e+00 : f32
    %97 = vector.broadcast %cst_52 : f32 to vector<2x32xf32>
    %98 = arith.addf %97, %96 : vector<2x32xf32>
    %99 = arith.divf %97, %98 : vector<2x32xf32>
    %100 = vector.extract_strided_slice %85 {offsets = [0, 32], sizes = [2, 32], strides = [1, 1]} : vector<2x96xf32> to vector<2x32xf32>
    %101 = vector.extract_strided_slice %91 {offsets = [0, 32], sizes = [2, 32], strides = [1, 1]} : vector<2x96xf32> to vector<2x32xf32>
    %102 = arith.addf %100, %101 : vector<2x32xf32>
    %103 = arith.negf %102 : vector<2x32xf32>
    %104 = math.exp %103 : vector<2x32xf32>
    %cst_53 = arith.constant 1.000000e+00 : f32
    %105 = vector.broadcast %cst_53 : f32 to vector<2x32xf32>
    %106 = arith.addf %105, %104 : vector<2x32xf32>
    %107 = arith.divf %105, %106 : vector<2x32xf32>
    %108 = vector.extract_strided_slice %85 {offsets = [0, 64], sizes = [2, 32], strides = [1, 1]} : vector<2x96xf32> to vector<2x32xf32>
    %109 = vector.extract_strided_slice %91 {offsets = [0, 64], sizes = [2, 32], strides = [1, 1]} : vector<2x96xf32> to vector<2x32xf32>
    %110 = arith.mulf %99, %109 : vector<2x32xf32>
    %111 = arith.addf %108, %110 : vector<2x32xf32>
    %112 = math.tanh %111 : vector<2x32xf32>
    %cst_54 = arith.constant 1.000000e+00 : f32
    %113 = vector.broadcast %cst_54 : f32 to vector<2x32xf32>
    %114 = arith.subf %113, %107 : vector<2x32xf32>
    %115 = arith.mulf %114, %112 : vector<2x32xf32>
    %116 = arith.mulf %107, %66 : vector<2x32xf32>
    %117 = arith.addf %115, %116 : vector<2x32xf32>
    %118 = arith.truncf %117 : vector<2x32xf32> to vector<2x32xbf16>
    %c0_55 = arith.constant 0 : index
    %c0_56 = arith.constant 0 : index
    %119 = vector.load %arg21[%c0_55, %c0_56] : memref<32x8xbf16, #tpu.memory_space<vmem>>, vector<32x8xbf16>
    %cst_57 = arith.constant dense<0.000000e+00> : vector<2x8xf32>
    %120 = tpu.matmul %118, %119, %cst_57 {dimension_numbers = #tpu.dot_dimension_numbers<[1], [0], [0], [1], [0, 0, 1, 1], [], []>} : vector<2x32xbf16>, vector<32x8xbf16>, vector<2x8xf32> -> vector<2x8xf32>
    %c0_58 = arith.constant 0 : index
    %c0_59 = arith.constant 0 : index
    %121 = vector.load %arg22[%c0_58, %c0_59] : memref<1x8xf32, #tpu.memory_space<vmem>>, vector<1x8xf32>
    %122 = vector.broadcast %121 : vector<1x8xf32> to vector<2x8xf32>
    %123 = arith.addf %120, %122 : vector<2x8xf32>
    %124 = arith.truncf %117 : vector<2x32xf32> to vector<2x32xbf16>
    %c0_60 = arith.constant 0 : index
    %c0_61 = arith.constant 0 : index
    %125 = vector.load %arg23[%c0_60, %c0_61] : memref<32x5xbf16, #tpu.memory_space<vmem>>, vector<32x5xbf16>
    %cst_62 = arith.constant dense<0.000000e+00> : vector<2x5xf32>
    %126 = tpu.matmul %124, %125, %cst_62 {dimension_numbers = #tpu.dot_dimension_numbers<[1], [0], [0], [1], [0, 0, 1, 1], [], []>} : vector<2x32xbf16>, vector<32x5xbf16>, vector<2x5xf32> -> vector<2x5xf32>
    %c0_63 = arith.constant 0 : index
    %c0_64 = arith.constant 0 : index
    %127 = vector.load %arg24[%c0_63, %c0_64] : memref<1x5xf32, #tpu.memory_space<vmem>>, vector<1x5xf32>
    %128 = vector.broadcast %127 : vector<1x5xf32> to vector<2x5xf32>
    %129 = arith.addf %126, %128 : vector<2x5xf32>
    %c0_65 = arith.constant 0 : index
    %c0_66 = arith.constant 0 : index
    %130 = vector.load %arg25[%c0_65, %c0_66] : memref<2x5xf32, #tpu.memory_space<vmem>>, vector<2x5xf32>
    tpu.vector_store %arg25[%c0_65, %c0_66], %129 {strides = array<i32>} : memref<2x5xf32, #tpu.memory_space<vmem>>, vector<2x5xf32>,
    %c0_67 = arith.constant 0 : index
    %c0_68 = arith.constant 0 : index
    %131 = vector.load %arg26[%c0_67, %c0_68] : memref<2x32xf32, #tpu.memory_space<vmem>>, vector<2x32xf32>
    tpu.vector_store %arg26[%c0_67, %c0_68], %117 {strides = array<i32>} : memref<2x32xf32, #tpu.memory_space<vmem>>, vector<2x32xf32>,
    %c0_69 = arith.constant 0 : index
    %c0_70 = arith.constant 0 : index
    %132 = vector.load %arg27[%c0_69, %c0_70] : memref<2x64xf32, #tpu.memory_space<vmem>>, vector<2x64xf32>
    tpu.vector_store %arg27[%c0_69, %c0_70], %51 {strides = array<i32>} : memref<2x64xf32, #tpu.memory_space<vmem>>, vector<2x64xf32>,
    %c0_71 = arith.constant 0 : index
    %c0_72 = arith.constant 0 : index
    %133 = vector.load %arg28[%c0_71, %c0_72] : memref<2x8xf32, #tpu.memory_space<vmem>>, vector<2x8xf32>
    tpu.vector_store %arg28[%c0_71, %c0_72], %123 {strides = array<i32>} : memref<2x8xf32, #tpu.memory_space<vmem>>, vector<2x8xf32>,
    return
  }
}

</mosaic_0001>

<bundles_post_ra>
// kernel: tpu_custom_call.1
= control target key start
LH: loop header
LB: loop body
LE: loop exit
PB: predicated region body
PF: predicated region fallthrough
CT: control target
= control target key end

     0   :  { %s1968_s0 = inlined_call_operand.hbm [shape: f32[2,16], index: 0, kind: input, shape index: {}]   ;;  %s1969_s1 = inlined_call_operand.vmem [shape: f32[2,1], index: 1, kind: input, shape index: {}]   ;;  %s1970_s2 = inlined_call_operand.hbm [shape: f32[2,64], index: 2, kind: input, shape index: {}]   ;;  %s1971_s3 = inlined_call_operand.hbm [shape: f32[2,16], index: 3, kind: input, shape index: {}]   ;;  %s1972_s4 = inlined_call_operand.hbm [shape: f32[2,32], index: 4, kind: input, shape index: {}]   ;;  %s1973_s5 = inlined_call_operand.hbm [shape: f32[2,8], index: 5, kind: input, shape index: {}]   ;;  %s1974_s6 = inlined_call_operand.vmem [shape: bf16[16,192], index: 6, kind: input, shape index: {}]   ;;  %s1975_s7 = inlined_call_operand.vmem [shape: bf16[16,192], index: 7, kind: input, shape index: {}]   ;;  %s1976_s8 = inlined_call_operand.vmem [shape: bf16[64,192], index: 8, kind: input, shape index: {}]   ;;  %s1977_s9 = inlined_call_operand.hbm [shape: f32[1,192], index: 9, kind: input, shape index: {}]   ;;  %s1978_s10 = inlined_call_operand.hbm [shape: f32[1,192], index: 10, kind: input, shape index: {}]   ;;  %s1979_s11 = inlined_call_operand.vmem [shape: bf16[64,16], index: 11, kind: input, shape index: {}]   ;;  %s1980_s12 = inlined_call_operand.hbm [shape: f32[1,16], index: 12, kind: input, shape index: {}]   ;;  %s1981_s13 = inlined_call_operand.vmem [shape: bf16[16,8], index: 13, kind: input, shape index: {}]   ;;  %s1982_s14 = inlined_call_operand.hbm [shape: f32[1,8], index: 14, kind: input, shape index: {}]   ;;  %s1983_s15 = inlined_call_operand.vmem [shape: bf16[16,96], index: 15, kind: input, shape index: {}]   ;;  %s1984_s16 = inlined_call_operand.hbm [shape: bf16[8,96], index: 16, kind: input, shape index: {}]   ;;  %s1985_s17 = inlined_call_operand.hbm [shape: bf16[8,96], index: 17, kind: input, shape index: {}]   ;;  %s1986_s18 = inlined_call_operand.vmem [shape: bf16[32,96], index: 18, kind: input, shape index: {}]   ;;  %s1987_s19 = inlined_call_operand.vmem [shape: f32[1,96], index: 19, kind: input, shape index: {}]   ;;  %s1988_s20 = inlined_call_operand.vmem [shape: f32[1,96], index: 20, kind: input, shape index: {}]   ;;  %s1989_s21 = inlined_call_operand.vmem [shape: bf16[32,8], index: 21, kind: input, shape index: {}]   ;;  %s1990_s22 = inlined_call_operand.vmem [shape: f32[1,8], index: 22, kind: input, shape index: {}]   ;;  %s1991_s23 = inlined_call_operand.vmem [shape: bf16[32,5], index: 23, kind: input, shape index: {}]   ;;  %s1992_s24 = inlined_call_operand.vmem [shape: f32[1,5], index: 24, kind: input, shape index: {}]   ;;  %s1993_s25 = inlined_call_operand.hbm [shape: f32[2,5], index: 25, kind: output, shape index: {0}]   ;;  %s1994_s26 = inlined_call_operand.hbm [shape: f32[2,32], index: 26, kind: output, shape index: {1}]   ;;  %s1995_s27 = inlined_call_operand.hbm [shape: f32[2,64], index: 27, kind: output, shape index: {2}]   ;;  %s1996_s28 = inlined_call_operand.hbm [shape: f32[2,8], index: 28, kind: output, shape index: {3}]  }
   0x1   :  { %2001 = sst [smem:[#allocation35_spill]] %s1968_s0 }
   0x2   :  { %2002 = sst [smem:[#allocation36_spill]] %s1969_s1 }
   0x3   :  { %2003 = sst [smem:[#allocation37_spill]] %s1970_s2 }
   0x4   :  { %2004 = sst [smem:[#allocation38_spill]] %s1971_s3 }
   0x5   :  { %2005 = sst [smem:[#allocation39_spill]] %s1972_s4 }
   0x6   :  { %2006 = sst [smem:[#allocation40_spill]] %s1973_s5 }
   0x7   :  { %2007 = sst [smem:[#allocation41_spill]] %s1974_s6 }
   0x8   :  { %2008 = sst [smem:[#allocation42_spill]] %s1975_s7 }
   0x9   :  { %2009 = sst [smem:[#allocation43_spill]] %s1976_s8 }
   0xa   :  { %2010 = sst [smem:[#allocation44_spill]] %s1977_s9 }
   0xb   :  { %2011 = sst [smem:[#allocation45_spill]] %s1978_s10 }
   0xc   :  { %2012 = sst [smem:[#allocation46_spill]] %s1979_s11 }
   0xd   :  { %2013 = sst [smem:[#allocation47_spill]] %s1980_s12 }
   0xe   :  { %34 = vsyncpa [#allocation3], 0 }
   0xf   :  { %35 = vsyncpa [#allocation6], 0 }
  0x10   :  { %36 = vsyncpa [#allocation9], 0 }
  0x11   :  { %37 = vsyncpa [#allocation12], 0 }
  0x12   :  { %38 = vsyncpa [#allocation15], 0 }
  0x13   :  { %39 = vsyncpa [#allocation18], 0 }
  0x14   :  { %40 = vsyncpa [#allocation4], 0 }
  0x15   :  { %41 = vsyncpa [#allocation22], 0 }
  0x16   :  { %42 = vsyncpa [#allocation25], 0  ;;  %s1604_s8 = smov [#allocation5]   ;;  %s1605_s9 = smov [#allocation8]  }
  0x17   :  { %s61_s5 = sshll.u32 %s1604_s8, 4  ;;  %s81_s30 = sshll.u32 %s1605_s9, 4  ;;  %s62_s5 = int_to_ptr.vmem [resolvable:$true] %s61_s5  ;;  %s82_s30 = int_to_ptr.vmem [resolvable:$true] %s81_s30 }
  0x18   :  { %s1294_s3 = scalar_lea.vmem %s62_s5, 32  ;;  %p1299_p1 = scmp.lt.s32.totalorder %s62_s5, %s62_s5 }
  0x19   :  { %p1295_p0 = scmp.ne.s32.totalorder %s62_s5, %s1294_s3  ;;  %p1300_p2 = scmp.lt.s32.totalorder %s1294_s3, %s1294_s3 }
  0x1b   :  { %p1301_p3 = por %p1300_p2, %p1299_p1 }
  0x1d   :  { %p1302_p4 = pnand %p1301_p3, %p1295_p0 }
  0x1f   :  { %1305 = shalt.err (!%p1302_p4)
}
  0x20   :  { %s2014_s0 = sld [smem:[#allocation37_spill]]  ;;  %s1314_s11 = scalar_lea.vmem %s82_s30, 32 }
  0x21   :  { %p1315_p5 = scmp.ne.s32.totalorder %s82_s30, %s1314_s11  ;;  %p1319_p6 = scmp.lt.s32.totalorder %s82_s30, %s82_s30 }
  0x22   :  { %p1320_p7 = scmp.lt.s32.totalorder %s1314_s11, %s1314_s11 }
  0x24   :  { %p1321_p8 = por %p1320_p7, %p1319_p6 }
  0x26   :  { %64 = dma.hbm_to_vmem [thread:$0]  %s2014_s0, 32, %s62_s5, [#allocation6]  }
  0x27   :  { %p1322_p9 = pnand %p1321_p8, %p1315_p5 }
  0x29   :  { %1325 = shalt.err (!%p1322_p9)
}
  0x2a   :  { %s2015_s7 = sld [smem:[#allocation39_spill]]  ;;  %s1606_s12 = smov [#allocation11]  }
  0x2b   :  { %s107_s1 = sshll.u32 %s1606_s12, 4  ;;  %s1607_s4 = smov [#allocation14]   ;;  %s108_s1 = int_to_ptr.vmem [resolvable:$true] %s107_s1 }
  0x2c   :  { %s129_s8 = sshll.u32 %s1607_s4, 4  ;;  %s1334_s9 = scalar_lea.vmem %s108_s1, 32  ;;  %s130_s8 = int_to_ptr.vmem [resolvable:$true] %s129_s8 }
  0x2d   :  { %p1335_p10 = scmp.ne.s32.totalorder %s108_s1, %s1334_s9  ;;  %p1339_p11 = scmp.lt.s32.totalorder %s108_s1, %s108_s1 }
  0x2e   :  { %p1340_p12 = scmp.lt.s32.totalorder %s1334_s9, %s1334_s9 }
  0x30   :  { %84 = dma.hbm_to_vmem [thread:$0]  %s2015_s7, 32, %s82_s30, [#allocation9]  }
  0x31   :  { %p1341_p13 = por %p1340_p12, %p1339_p11 }
  0x33   :  { %p1342_p0 = pnand %p1341_p13, %p1335_p10 }
  0x35   :  { %1345 = shalt.err (!%p1342_p0)
}
  0x36   :  { %s2016_s6 = sld [smem:[#allocation44_spill]]  ;;  %s1354_s10 = scalar_lea.vmem %s130_s8, 16 }
  0x37   :  { %p1355_p1 = scmp.ne.s32.totalorder %s130_s8, %s1354_s10  ;;  %s1358_s30 = scalar_lea.vmem %s130_s8, 32 }
  0x38   :  { %p1359_p2 = scmp.lt.s32.totalorder %s130_s8, %s130_s8  ;;  %p1360_p3 = scmp.lt.s32.totalorder %s1358_s30, %s1354_s10 }
  0x3a   :  { %p1361_p4 = por %p1360_p3, %p1359_p2 }
  0x3c   :  { %110 = dma.hbm_to_vmem [thread:$0]  %s2016_s6, 32, %s108_s1, [#allocation12]  }
  0x3d   :  { %p1362_p5 = pnand %p1361_p4, %p1355_p1 }
  0x3f   :  { %1365 = shalt.err (!%p1362_p5)
}
  0x40   :  { %s2017_s29 = sld [smem:[#allocation47_spill]]  ;;  %s1608_s2 = smov [#allocation17]  }
  0x41   :  { %s153_s7 = sshll.u32 %s1608_s2, 4  ;;  %s1609_s12 = smov [#allocation2]   ;;  %s154_s7 = int_to_ptr.vmem [resolvable:$true] %s153_s7 }
  0x42   :  { %s49_s4 = sshll.u32 %s1609_s12, 4  ;;  %s1374_s9 = scalar_lea.vmem %s154_s7, 64  ;;  %s50_s4 = int_to_ptr.vmem [resolvable:$true] %s49_s4 }
  0x43   :  { %p1375_p6 = scmp.ne.s32.totalorder %s154_s7, %s1374_s9  ;;  %p1379_p7 = scmp.lt.s32.totalorder %s154_s7, %s154_s7 }
  0x44   :  { %p1380_p8 = scmp.lt.s32.totalorder %s1374_s9, %s1374_s9 }
  0x46   :  { %132 = dma.hbm_to_vmem [thread:$0]  %s2017_s29, 16, %s130_s8, [#allocation15]  }
  0x47   :  { %p1381_p9 = por %p1380_p8, %p1379_p7 }
  0x49   :  { %p1382_p10 = pnand %p1381_p9, %p1375_p6 }
  0x4b   :  { %1385 = shalt.err (!%p1382_p10)
}
  0x4c   :  { %156 = dma.hbm_to_vmem [thread:$0]  %s1984_s16, 64, %s154_s7, [#allocation18]  }
  0x4d   :  { %s1394_s3 = scalar_lea.vmem %s50_s4, 32  ;;  %p1399_p12 = scmp.lt.s32.totalorder %s50_s4, %s50_s4 }
  0x4e   :  { %p1395_p11 = scmp.ne.s32.totalorder %s50_s4, %s1394_s3  ;;  %p1400_p13 = scmp.lt.s32.totalorder %s1394_s3, %s1394_s3 }
  0x50   :  { %p1401_p0 = por %p1400_p13, %p1399_p12 }
  0x52   :  { %p1402_p1 = pnand %p1401_p0, %p1395_p11 }
  0x54   :  { %1405 = shalt.err (!%p1402_p1)
}
  0x55   :  { %s2018_s10 = sld [smem:[#allocation35_spill]]  ;;  %s1610_s30 = smov [#allocation7]  }
  0x56   :  { %s71_s0 = sshll.u32 %s1610_s30, 4  ;;  %s1611_s11 = smov [#allocation10]   ;;  %s72_s0 = int_to_ptr.vmem [resolvable:$true] %s71_s0 }
  0x57   :  { %s91_s29 = sshll.u32 %s1611_s11, 4  ;;  %s1414_s2 = scalar_lea.vmem %s72_s0, 32  ;;  %s92_s29 = int_to_ptr.vmem [resolvable:$true] %s91_s29 }
  0x58   :  { %p1415_p2 = scmp.ne.s32.totalorder %s72_s0, %s1414_s2  ;;  %p1419_p3 = scmp.lt.s32.totalorder %s72_s0, %s72_s0 }
  0x59   :  { %p1420_p4 = scmp.lt.s32.totalorder %s1414_s2, %s1414_s2 }
  0x5b   :  { %52 = dma.hbm_to_vmem [thread:$0]  %s2018_s10, 32, %s50_s4, [#allocation3]  }
  0x5c   :  { %p1421_p5 = por %p1420_p4, %p1419_p3 }
  0x5e   :  { %p1422_p6 = pnand %p1421_p5, %p1415_p2 }
  0x60   :  { %1425 = shalt.err (!%p1422_p6)
}
  0x61   :  { %s2019_s12 = sld [smem:[#allocation38_spill]]  ;;  %s1434_s9 = scalar_lea.vmem %s92_s29, 32 }
  0x62   :  { %p1435_p7 = scmp.ne.s32.totalorder %s92_s29, %s1434_s9  ;;  %p1439_p8 = scmp.lt.s32.totalorder %s92_s29, %s92_s29 }
  0x63   :  { %p1440_p9 = scmp.lt.s32.totalorder %s1434_s9, %s1434_s9 }
  0x65   :  { %p1441_p10 = por %p1440_p9, %p1439_p8 }
  0x67   :  { %74 = dma.hbm_to_vmem [thread:$0]  %s2019_s12, 32, %s72_s0, [#allocation6]  }
  0x68   :  { %p1442_p11 = pnand %p1441_p10, %p1435_p7 }
  0x6a   :  { %1445 = shalt.err (!%p1442_p11)
}
  0x6b   :  { %s2020_s5 = sld [smem:[#allocation40_spill]]  ;;  %s1612_s3 = smov [#allocation13]  }
  0x6c   :  { %s117_s8 = sshll.u32 %s1612_s3, 4  ;;  %s1613_s6 = smov [#allocation16]   ;;  %s118_s8 = int_to_ptr.vmem [resolvable:$true] %s117_s8 }
  0x6d   :  { %s141_s10 = sshll.u32 %s1613_s6, 4  ;;  %s1454_s30 = scalar_lea.vmem %s118_s8, 32  ;;  %s142_s10 = int_to_ptr.vmem [resolvable:$true] %s141_s10 }
  0x6e   :  { %p1455_p12 = scmp.ne.s32.totalorder %s118_s8, %s1454_s30  ;;  %p1459_p13 = scmp.lt.s32.totalorder %s118_s8, %s118_s8 }
  0x6f   :  { %p1460_p0 = scmp.lt.s32.totalorder %s1454_s30, %s1454_s30 }
  0x71   :  { %94 = dma.hbm_to_vmem [thread:$0]  %s2020_s5, 32, %s92_s29, [#allocation9]  }
  0x72   :  { %p1461_p1 = por %p1460_p0, %p1459_p13 }
  0x74   :  { %p1462_p2 = pnand %p1461_p1, %p1455_p12 }
  0x76   :  { %1465 = shalt.err (!%p1462_p2)
}
  0x77   :  { %s2021_s2 = sld [smem:[#allocation45_spill]]  ;;  %s1474_s16 = scalar_lea.vmem %s142_s10, 16 }
  0x78   :  { %p1475_p3 = scmp.ne.s32.totalorder %s142_s10, %s1474_s16  ;;  %s1478_s29 = scalar_lea.vmem %s142_s10, 32 }
  0x79   :  { %p1479_p4 = scmp.lt.s32.totalorder %s142_s10, %s142_s10  ;;  %p1480_p5 = scmp.lt.s32.totalorder %s1478_s29, %s1474_s16 }
  0x7b   :  { %p1481_p6 = por %p1480_p5, %p1479_p4 }
  0x7d   :  { %120 = dma.hbm_to_vmem [thread:$0]  %s2021_s2, 32, %s118_s8, [#allocation12]  }
  0x7e   :  { %p1482_p7 = pnand %p1481_p6, %p1475_p3 }
  0x80   :  { %1485 = shalt.err (!%p1482_p7)
}
  0x81   :  { %144 = dma.hbm_to_vmem [thread:$0]  %s1982_s14, 16, %s142_s10, [#allocation15]  }
  0x82   :  { %s1614_s9 = smov [#allocation19]  }
  0x83   :  { %s163_s4 = sshll.u32 %s1614_s9, 4  ;;  %s164_s4 = int_to_ptr.vmem [resolvable:$true] %s163_s4 }
  0x84   :  { %s1494_s1 = scalar_lea.vmem %s164_s4, 64  ;;  %p1499_p9 = scmp.lt.s32.totalorder %s164_s4, %s164_s4 }
  0x85   :  { %p1495_p8 = scmp.ne.s32.totalorder %s164_s4, %s1494_s1  ;;  %p1500_p10 = scmp.lt.s32.totalorder %s1494_s1, %s1494_s1 }
  0x87   :  { %p1501_p11 = por %p1500_p10, %p1499_p9 }
  0x89   :  { %p1502_p12 = pnand %p1501_p11, %p1495_p8 }
  0x8b   :  { %1505 = shalt.err (!%p1502_p12)
}
  0x8c   :  { %166 = dma.hbm_to_vmem [thread:$0]  %s1985_s17, 64, %s164_s4, [#allocation18]  }
  0x8d   :  { %1586 = dma.done.wait [#allocation3], 32  }
  0x8e   :  { %1587 = vsyncadd [#allocation3], 4294967264 }
  0x8f   :  { %1588 = dma.done.wait [#allocation6], 64  }
  0x90   :  { %1589 = vsyncadd [#allocation6], 4294967232 }
  0x91   :  { %1590 = dma.done.wait [#allocation9], 64  }
  0x92   :  { %1591 = vsyncadd [#allocation9], 4294967232 }
  0x93   :  { %1592 = dma.done.wait [#allocation12], 64  }
  0x94   :  { %1593 = vsyncadd [#allocation12], 4294967232 }
  0x95   :  { %1594 = dma.done.wait [#allocation15], 32  }
  0x96   :  { %1595 = vsyncadd [#allocation15], 4294967264 }
  0x97   :  { %1596 = dma.done.wait [#allocation18], 128  }
  0x98   :  { %1597 = vsyncadd [#allocation18], 4294967168  ;;  %v1615_v0 = vmov 0   ;;  %s2022_s6 = sld [smem:[#allocation36_spill]]  ;;  %v223_v7 = vld [vmem:[#allocation5] sm:$0x3]  ;;  %v344_v26 = vlaneseq }
  0x99   :  { %1243 = vset.pattern.permute.xlu0 %v1615_v0  ;;  %279 = vmatprep.mubr.bf16.mxu0 %v1615_v0  ;;  %s2023_s30 = sld [smem:[#allocation42_spill]]  ;;  %v225_v8 = vld [vmem:[#allocation7] sm:$0x3]  ;;  %v216_v9 = vld [vmem:[#allocation2] sm:$0x3]  ;;  %vm243_vm0 = vcmask 130048  }
  0x9a   :  { %333 = vmatprep.mubr.bf16.mxu1 %v1615_v0  ;;  %s2024_s29 = sld [smem:[#allocation41_spill]]  ;;  %s1616_s14 = smov 64   ;;  %vm417_vm1 = vcmask 523264   ;;  %v345_v30 = vshrl.u32 %v344_v26, 7  ;;  %v342_v35 = vld [vmem:[#allocation11] sm:$0x3] }
  0x9b   :  { %s2025_s1 = sld [smem:[#allocation43_spill]]  ;;  %v365_v36 = vld [vmem:[#allocation13] sm:$0x3]  ;;  %v1617_v60 = vmov 0.0   ;;  %vm1618_vm2 = vmmov 0   ;;  %vm642_vm3 = vcmask 1043456  }
  0x9c   :  { %v346_v34 = vsub.s32 0, %v345_v30  ;;  %v350_v50 = vsub.s32 1, %v345_v30  ;;  %vm813_vm4 = vcmask 261120   ;;  %v733_v30 = vld [vmem:[#allocation19] sm:$0xf]  ;;  %vm638_vm5 = vcmask 64512  }
  0x9d   :  { %s1619_s9 = smov 32   ;;  %s1620_s10 = smov 96   ;;  %vm1026_vm6 = vcmask 254976   ;;  %vm1032_vm7 = vcmask 517120  }
  0x9e   :  { %v215_v1 = vld [vmem:[%s2022_s6] sm:$0x3]  ;;  %v347_v38 = vrot.slane %v342_v35, %v346_v34  ;;  %v370_v39 = vrot.slane %v365_v36, %v346_v34  ;;  %v374_v51 = vrot.slane %v365_v36, %v350_v50  ;;  %v351_v53 = vrot.slane %v342_v35, %v350_v50  ;;  %v631_v35 = vld [vmem:[#allocation10] sm:$0x3] }
  0x9f   :  { %219 = vperm.xlu0 %1243, %v215_v1   ;;  %v1244_v2 = vld [vmem:[%s2023_s30 + $0x4] ss:$8 sps:$4 sm:$0xff]   ;;  %v1246_v3 = vld [vmem:[%s2023_s30] ss:$8 sps:$4 sm:$0xff]   ;;  %v738_v34 = vsel %vm642_vm3, %v733_v30, 0 }
  0xa0   :  { %261 = vmatprep.subr.bf16.mxu0 %v1244_v2  ;;  %v1247_v4 = vld [vmem:[%s2024_s29 + $0x4] ss:$8 sps:$4 sm:$0xff]   ;;  %v1249_v5 = vld [vmem:[%s2024_s29] ss:$8 sps:$4 sm:$0xff]  }
  0xa1   :  { %262 = vmatpush1.bf16.msra.mxu0 %v1246_v3  ;;  %315 = vmatprep.subr.bf16.mxu1 %v1247_v4  ;;  %v1252_v6 = vld [vmem:[%s2025_s1 + $0x34] ss:$8 sps:$4 sm:$0xff]   ;;  %v1250_v13 = vld [vmem:[%s2025_s1 + $0x30] ss:$8 sps:$4 sm:$0xff]   ;;  %v1255_v16 = vld [vmem:[%s2025_s1 + $0x24] ss:$8 sps:$4 sm:$0xff]  }
  0xa2   :  { %316 = vmatpush1.bf16.msra.mxu1 %v1249_v5  ;;  %429 = vmatprep.subr.bf16.mxu0 %v1252_v6  ;;  %v1253_v18 = vld [vmem:[%s2025_s1 + $0x20] ss:$8 sps:$4 sm:$0xff]   ;;  %v1258_v19 = vld [vmem:[%s2025_s1 + $0x14] ss:$8 sps:$4 sm:$0xff]   ;;  %v1256_v20 = vld [vmem:[%s2025_s1 + $0x10] ss:$8 sps:$4 sm:$0xff]  }
  0xa3   :  { %v1261_v21 = vld [vmem:[%s2025_s1 + $0x4] ss:$8 sps:$4 sm:$0xff]   ;;  %v1259_v22 = vld [vmem:[%s2025_s1] ss:$8 sps:$4 sm:$0xff]   ;;  %s2026_s1 = sld [smem:[#allocation46_spill]]  ;;  %1162 = vmatprep.subr.bf16.mxu1 %v1617_v60 }
  0xa4   :  { %v1266_v1 = vld [vmem:[%s1981_s13] sm:$0xff]  }
  0xa9   :  { %v1262_v59 = vld [vmem:[%s2026_s1 + $0x18] sm:$0xff]   ;;  %v1263_v61 = vld [vmem:[%s2026_s1 + $0x10] sm:$0xff]   ;;  %v1264_v63 = vld [vmem:[%s2026_s1 + $0x8] sm:$0xff]  }
 0x11a   :  { %v1821_v10 = vpop.permute.xlu0 %219 }
 0x11b   :  { %v224_v11 = vmul.f32 %v223_v7, %v1821_v10  ;;  %v226_v12 = vmul.f32 %v225_v8, %v1821_v10  ;;  %v222_v14 = vmul.f32 %v1821_v10, %v216_v9 }
 0x11d   :  { %479 = vrot.lane.b32.xlu1 %v224_v11, %s1616_s14  ;;  %v230_v15 = vpack.c.bf16 %v226_v12, %v226_v12  ;;  %v1833_v17 = vpack.c.bf16 %v222_v14, %v222_v14  ;;  %v356_v23 = vpack.c.bf16 %v224_v11, %v224_v11  ;;  %v637_v11 = vld [vmem:[#allocation17] sm:$0xf] }
 0x11e   :  { %v644_v12 = vsel %vm642_vm3, %v637_v11, 0  ;;  %v1272_v11 = vld [vmem:[%s1989_s21] sm:$0xff]  }
 0x11f   :  { %1099 = vmatmul.mubr.msk.bf16.vlgmr.msra.gmra.mxu0 %vm243_vm0, %v230_v15  ;;  %1102 = vmatmul.mubr.msk.bf16.vlgmr.msra.gmra.mxu1 %vm243_vm0, %v1833_v17 }
 0x120   :  { %430 = vmatpush1.bf16.msra.mxu0 %v1250_v13  ;;  %453 = vmatprep.mubr.bf16.mxu0 %v1615_v0  ;;  %v1265_v0 = vld [vmem:[%s2026_s1] sm:$0xff]   ;;  %v1113_v13 = vld [vmem:[#allocation14] ss:$0 sm:$0xff] }
 0x121   :  { %431 = vmatprep.subr.bf16.mxu0 %v1255_v16  ;;  %1170 = vmatprep.mubr.msk.bf16.mxu1 %vm1618_vm2, %v1617_v60 }
 0x122   :  { %1163 = vmatpush3.bf16.msra.mxu1 %v1262_v59 }
 0x123   :  { %1164 = vmatprep.subr.bf16.mxu1 %v1617_v60 }
 0x124   :  { %432 = vmatpush1.bf16.msra.mxu0 %v1253_v18  ;;  %v1267_v18 = vld [vmem:[%s1983_s15] sm:$0xff]  }
 0x125   :  { %433 = vmatprep.subr.bf16.mxu0 %v1258_v19 }
 0x126   :  { %1165 = vmatpush3.bf16.msra.mxu1 %v1263_v61 }
 0x127   :  { %1166 = vmatprep.subr.bf16.mxu1 %v1617_v60 }
 0x128   :  { %434 = vmatpush1.bf16.msra.mxu0 %v1256_v20 }
 0x129   :  { %435 = vmatprep.subr.bf16.mxu0 %v1261_v21 }
 0x12a   :  { %1167 = vmatpush3.bf16.msra.mxu1 %v1264_v63 }
 0x12b   :  { %1168 = vmatprep.subr.bf16.mxu1 %v1617_v60 }
 0x12c   :  { %436 = vmatpush1.bf16.msra.mxu0 %v1259_v22  ;;  %v1268_v22 = vld [vmem:[%s1986_s18 + $0x8] sm:$0xff]  }
 0x12d   :  { %1174 = vmatprep.subr.bf16.mxu0 %v1617_v60 }
 0x12e   :  { %1169 = vmatpush3.bf16.msra.mxu1 %v1265_v0 }
 0x12f   :  { %1111 = vmatmul.mubr.msk.bf16.vlgmr.msra.gmra.mxu0 %vm417_vm1, %v356_v23  ;;  %1180 = vmatprep.subr.bf16.mxu1 %v1617_v60  ;;  %v629_v23 = vld [vmem:[#allocation8] sm:$0x3] }
 0x130   :  { %1176 = vmatprep.mubr.msk.bf16.mxu0 %vm1618_vm2, %v1617_v60  ;;  %1175 = vmatpush3.bf16.msra.mxu0 %v1266_v1 }
 0x131   :  { %1186 = vmatprep.subr.bf16.mxu0 %v1617_v60 }
 0x18f   :  { %v480_v3 = vpop.permute.xlu1 %479 }
 0x1df   :  { %v281_v24 = vpop.f32.mrf.mxu0  ;;  %v335_v25 = vpop.f32.mrf.mxu1 }
 0x1e0   :  { %v336_v37 = vadd.f32 %v335_v25, %v281_v24  ;;  %v1269_v24 = vld [vmem:[%s1986_s18] sm:$0xff]   ;;  %v630_v25 = vmul.f32 %v629_v23, %v1821_v10 }
 0x1e1   :  { %v283_v27 = vpop.f32.mrf.mxu0  ;;  %v337_v28 = vpop.f32.mrf.mxu1 }
 0x1e2   :  { %v354_v41 = vadd.f32 %v347_v38, %v336_v37  ;;  %v338_v52 = vadd.f32 %v337_v28, %v283_v27  ;;  %v789_v26 = vpack.c.bf16 %v630_v25, %v630_v25  ;;  %v632_v38 = vmul.f32 %v631_v35, %v1821_v10 }
 0x1e3   :  { %v285_v29 = vpop.f32.mrf.mxu0  ;;  %v339_v31 = vpop.f32.mrf.mxu1 }
 0x1e4   :  { %v355_v56 = vadd.f32 %v351_v53, %v338_v52 }
 0x1e5   :  { %v286_v32 = vpop.f32.mrf.mxu0  ;;  %v340_v33 = vpop.f32.mrf.mxu1 }
 0x1ef   :  { %v455_v40 = vpop.f32.mrf.mxu0 }
 0x1f0   :  { %v456_v42 = vadd.f32 %v455_v40, %v370_v39 }
 0x1f1   :  { %v457_v43 = vpop.f32.mrf.mxu0 }
 0x1f2   :  { %v462_v44 = vadd.f32 %v456_v42, %v354_v41  ;;  %v458_v54 = vadd.f32 %v457_v43, %v374_v51  ;;  %v732_v41 = vpack.c.bf16 %v632_v38, %v632_v38  ;;  %v1127_v43 = vld [vmem:[%s1988_s20] ss:$0 sm:$0xff] }
 0x1f3   :  { %v459_v45 = vpop.f32.mrf.mxu0 }
 0x1f4   :  { %v1112_v46 = vmul.f32 -1.442695, %v462_v44 }
 0x1f5   :  { %v460_v47 = vpop.f32.mrf.mxu0 }
 0x1f6   :  { %1274 = vpow2.f32 %v1112_v46 }
 0x203   :  { %v1275_v48 = vpop.eup %1274 }
 0x204   :  { %v466_v49 = vadd.f32 1.0, %v1275_v48 }
 0x206   :  { %1276 = vrcp.f32 %v466_v49 }
 0x213   :  { %v1277_v55 = vpop.eup %1276 }
 0x214   :  { %v469_v57 = vmul.f32 %v1277_v55, %v458_v54  ;;  %v472_v2 = vsub.f32 1.0, %v1277_v55  ;;  %v482_v5 = vmul.f32 %v1277_v55, %v480_v3  ;;  %v1126_v54 = vld [vmem:[%s1987_s19] ss:$0 sm:$0xff] }
 0x216   :  { %v470_v58 = vadd.f32 %v469_v57, %v355_v56 }
 0x218   :  { %1278 = vtanh.f32 %v470_v58 }
 0x225   :  { %v1279_v62 = vpop.eup %1278 }
 0x226   :  { %474 = vrot.lane.b32.xlu0 %v1279_v62, %s1616_s14 }
 0x298   :  { %v475_v4 = vpop.permute.xlu0 %474 }
 0x299   :  { %v477_v6 = vmul.f32 %v475_v4, %v472_v2 }
 0x29b   :  { %v1881_v7 = vadd.f32 %v482_v5, %v477_v6  ;;  %v1270_v6 = vld [vmem:[%s1989_s21 + $0x8] sm:$0xff]   ;;  %s1621_s21 = smov [#allocation21]  }
 0x29d   :  { %v484_v8 = vpack.c.bf16 %v1881_v7, %v1881_v7 }
 0x29f   :  { %501 = vrot.lane.b32.xlu1 %v484_v8, %s1616_s14  ;;  %v1271_v8 = vld [vmem:[%s1991_s23 + $0x8] sm:$0xff]  }
 0x311   :  { %v502_v9 = vpop.permute.xlu1 %501 }
 0x312   :  { %1171 = vmatmul.mubr.msk.bf16.vlgmr.msra.gmra.mxu1 %vm417_vm1, %v502_v9 }
 0x313   :  { %1182 = vmatprep.mubr.msk.bf16.mxu1 %vm1618_vm2, %v1617_v60  ;;  %1181 = vmatpush3.bf16.msra.mxu1 %v644_v12  ;;  %v1273_v12 = vld [vmem:[%s1991_s23] sm:$0xff]   ;;  %s1052_s23 = sshll.u32 %s1621_s21, 4  ;;  %s1053_s23 = int_to_ptr.vmem [resolvable:$true] %s1052_s23 }
 0x314   :  { %1192 = vmatprep.subr.bf16.mxu1 %v1617_v60  ;;  %s1506_s30 = scalar_lea.vmem %s1053_s23, 32  ;;  %p1511_p0 = scmp.lt.s32.totalorder %s1053_s23, %s1053_s23 }
 0x315   :  { %p1507_p13 = scmp.ne.s32.totalorder %s1053_s23, %s1506_s30  ;;  %p1512_p1 = scmp.lt.s32.totalorder %s1506_s30, %s1506_s30 }
 0x317   :  { %p1513_p2 = por %p1512_p1, %p1511_p0 }
 0x319   :  { %p1514_p3 = pnand %p1513_p2, %p1507_p13 }
 0x3d2   :  { %v564_v14 = vpop.f32.mrf.mxu1 }
 0x3d3   :  { %v565_v15 = vadd.f32 %v1113_v13, %v564_v14 }
 0x3d4   :  { %v1172_v16 = vpop.f32.mrf.mxu1 }
 0x3d5   :  { %v570_v19 = vpack.c.bf16 %v565_v15, %v565_v15 }
 0x3d6   :  { %v567_v20 = vpop.f32.mrf.mxu1 }
 0x3d7   :  { %1177 = vmatmul.mubr.msk.bf16.vlgmr.msra.gmra.mxu0 %vm243_vm0, %v570_v19 }
 0x3d8   :  { %v1173_v21 = vpop.f32.mrf.mxu1  ;;  %1187 = vmatpush3.bf16.msra.mxu0 %v1267_v18  ;;  %1188 = vmatprep.mubr.msk.bf16.mxu0 %vm1618_vm2, %v1617_v60 }
 0x3d9   :  { %1198 = vmatprep.subr.bf16.mxu0 %v1617_v60 }
 0x3df   :  { %1189 = vmatmul.mubr.msk.bf16.vlgmr.msra.gmra.mxu0 %vm243_vm0, %v1833_v17  ;;  %v1119_v17 = vld [vmem:[#allocation16] ss:$0 sm:$0xff] }
 0x3e0   :  { %1199 = vmatpush3.bf16.msra.mxu0 %v1268_v22  ;;  %1202 = vmatprep.mubr.msk.bf16.mxu0 %vm1618_vm2, %v1617_v60 }
 0x3e1   :  { %1200 = vmatprep.subr.bf16.mxu0 %v1617_v60 }
 0x3e4   :  { %1201 = vmatpush3.bf16.msra.mxu0 %v1269_v24 }
 0x3e5   :  { %1214 = vmatprep.subr.bf16.mxu0 %v1617_v60 }
 0x3e7   :  { %1203 = vmatmul.mubr.msk.bf16.vlgmr.msra.gmra.mxu0 %vm813_vm4, %v789_v26 }
 0x3e8   :  { %1218 = vmatprep.mubr.msk.bf16.mxu0 %vm1618_vm2, %v1617_v60  ;;  %1215 = vmatpush3.bf16.msra.mxu0 %v1271_v8 }
 0x3e9   :  { %1216 = vmatprep.subr.bf16.mxu0 %v1617_v60 }
 0x3ec   :  { %1217 = vmatpush3.bf16.msra.mxu0 %v1273_v12 }
 0x497   :  { %v623_v27 = vpop.f32.mrf.mxu0 }
 0x498   :  { %v624_v28 = vadd.f32 %v1119_v17, %v623_v27 }
 0x499   :  { %v1178_v29 = vpop.f32.mrf.mxu0 }
 0x49a   :  { %v635_v31 = vmul.f32 %v624_v28, %v1821_v10 }
 0x49b   :  { %v626_v32 = vpop.f32.mrf.mxu0 }
 0x49c   :  { %v636_v33 = vpack.c.bf16 %v635_v31, %v635_v31 }
 0x49d   :  { %v1179_v36 = vpop.f32.mrf.mxu0 }
 0x49e   :  { %1183 = vmatmul.mubr.msk.bf16.vlgmr.msra.gmra.mxu1 %vm638_vm5, %v636_v33 }
 0x49f   :  { %1193 = vmatpush3.bf16.msra.mxu1 %v738_v34  ;;  %v726_v37 = vpop.f32.mrf.mxu0  ;;  %1194 = vmatprep.mubr.msk.bf16.mxu1 %vm1618_vm2, %v1617_v60 }
 0x4a0   :  { %1206 = vmatprep.subr.bf16.mxu1 %v1617_v60 }
 0x4a1   :  { %v1190_v39 = vpop.f32.mrf.mxu0 }
 0x4a3   :  { %v729_v40 = vpop.f32.mrf.mxu0 }
 0x4a5   :  { %v1191_v42 = vpop.f32.mrf.mxu0 }
 0x4a6   :  { %1195 = vmatmul.mubr.msk.bf16.vlgmr.msra.gmra.mxu1 %vm638_vm5, %v732_v41 }
 0x4a7   :  { %v851_v44 = vpop.f32.mrf.mxu0  ;;  %1210 = vmatprep.mubr.msk.bf16.mxu1 %vm1618_vm2, %v1617_v60  ;;  %1207 = vmatpush3.bf16.msra.mxu1 %v1270_v6 }
 0x4a8   :  { %v852_v45 = vadd.f32 %v1127_v43, %v851_v44  ;;  %1208 = vmatprep.subr.bf16.mxu1 %v1617_v60 }
 0x4a9   :  { %v1204_v46 = vpop.f32.mrf.mxu0 }
 0x4aa   :  { %865 = vrot.lane.b32.xlu0 %v852_v45, %s1616_s14 }
 0x4ab   :  { %v854_v10 = vpop.f32.mrf.mxu0  ;;  %1209 = vmatpush3.bf16.msra.mxu1 %v1272_v11 }
 0x4ad   :  { %v1205_v47 = vpop.f32.mrf.mxu0 }
 0x51c   :  { %v866_v2 = vpop.permute.xlu0 %865 }
 0x55e   :  { %v680_v48 = vpop.f32.mrf.mxu1 }
 0x55f   :  { %v727_v52 = vadd.f32 %v726_v37, %v680_v48 }
 0x560   :  { %v1184_v49 = vpop.f32.mrf.mxu1 }
 0x562   :  { %v683_v50 = vpop.f32.mrf.mxu1 }
 0x564   :  { %v1185_v51 = vpop.f32.mrf.mxu1 }
 0x566   :  { %v774_v53 = vpop.f32.mrf.mxu1 }
 0x567   :  { %v780_v55 = vadd.f32 %v774_v53, %v727_v52 }
 0x568   :  { %v1196_v56 = vpop.f32.mrf.mxu1 }
 0x569   :  { %v788_v57 = vadd.f32 %v1126_v54, %v780_v55 }
 0x56a   :  { %v777_v58 = vpop.f32.mrf.mxu1 }
 0x56b   :  { %v857_v59 = vadd.f32 %v852_v45, %v788_v57 }
 0x56c   :  { %v1197_v61 = vpop.f32.mrf.mxu1 }
 0x56d   :  { %v1131_v62 = vmul.f32 -1.442695, %v857_v59 }
 0x56f   :  { %1280 = vpow2.f32 %v1131_v62 }
 0x57c   :  { %v1281_v63 = vpop.eup %1280 }
 0x57d   :  { %v861_v0 = vadd.f32 1.0, %v1281_v63 }
 0x57f   :  { %1282 = vrcp.f32 %v861_v0 }
 0x58c   :  { %v1283_v1 = vpop.eup %1282 }
 0x58d   :  { %v868_v3 = vmul.f32 %v1283_v1, %v866_v2  ;;  %v875_v14 = vsub.f32 1.0, %v1283_v1 }
 0x58f   :  { %870 = vrot.lane.b32.xlu1 %v868_v3, %s1616_s14 }
 0x593   :  { %882 = vrot.lane.b32.xlu1 %v630_v25, %s1619_s9 }
 0x601   :  { %v871_v4 = vpop.permute.xlu1 %870 }
 0x602   :  { %v873_v5 = vadd.f32 %v871_v4, %v788_v57 }
 0x604   :  { %1284 = vtanh.f32 %v873_v5 }
 0x605   :  { %v883_v13 = vpop.permute.xlu1 %882 }
 0x606   :  { %v885_v16 = vmul.f32 %v1283_v1, %v883_v13 }
 0x611   :  { %v1285_v9 = vpop.eup %1284 }
 0x612   :  { %877 = vrot.lane.b32.xlu0 %v1285_v9, %s1620_s10 }
 0x684   :  { %v878_v15 = vpop.permute.xlu0 %877 }
 0x685   :  { %v880_v18 = vmul.f32 %v878_v15, %v875_v14 }
 0x687   :  { %v886_v19 = vadd.f32 %v885_v16, %v880_v18 }
 0x689   :  { %1023 = vrot.lane.b32.xlu1 %v886_v19, %s1620_s10  ;;  %v887_v20 = vpack.c.bf16 %v886_v19, %v886_v19 }
 0x68b   :  { %900 = vrot.lane.b32.xlu0 %v887_v20, %s1620_s10 }
 0x68f   :  { %1029 = vrot.lane.b32.xlu0 %v1881_v7, %s1616_s14 }
 0x6fb   :  { %v1024_v21 = vpop.permute.xlu1 %1023 }
 0x6fc   :  { %1027 = vst.msk [vmem:[#allocation21] sm:$0x3] %vm1026_vm6, %v1024_v21 }
 0x6fd   :  { %v901_v22 = vpop.permute.xlu0 %900 }
 0x6fe   :  { %1211 = vmatmul.mubr.msk.bf16.vlgmr.msra.gmra.mxu1 %vm813_vm4, %v901_v22  ;;  %1219 = vmatmul.mubr.msk.bf16.vlgmr.msra.gmra.mxu0 %vm813_vm4, %v901_v22 }
 0x701   :  { %v1030_v60 = vpop.permute.xlu0 %1029 }
 0x702   :  { %1033 = vst.msk [vmem:[#allocation23] sm:$0x3] %vm1032_vm7, %v1030_v60 }
 0x703   :  { %1517 = shalt.err (!%p1514_p3)
}
 0x704   :  { %1055 = dma.vmem_to_hbm [thread:$0]  %s1053_s23, 32, %s1994_s26, [#allocation22]  }
 0x705   :  { %s1622_s13 = smov [#allocation23]  }
 0x706   :  { %s1062_s11 = sshll.u32 %s1622_s13, 4  ;;  %s1063_s11 = int_to_ptr.vmem [resolvable:$true] %s1062_s11 }
 0x707   :  { %s1526_s2 = scalar_lea.vmem %s1063_s11, 32  ;;  %p1531_p5 = scmp.lt.s32.totalorder %s1063_s11, %s1063_s11 }
 0x708   :  { %p1527_p4 = scmp.ne.s32.totalorder %s1063_s11, %s1526_s2  ;;  %p1532_p6 = scmp.lt.s32.totalorder %s1526_s2, %s1526_s2 }
 0x70a   :  { %p1533_p7 = por %p1532_p6, %p1531_p5 }
 0x70c   :  { %p1534_p8 = pnand %p1533_p7, %p1527_p4 }
 0x70e   :  { %1537 = shalt.err (!%p1534_p8)
}
 0x70f   :  { %1065 = dma.vmem_to_hbm [thread:$0]  %s1063_s11, 32, %s1995_s27, [#allocation22]   ;;  %v1132_v7 = vld [vmem:[%s1990_s22] ss:$0 sm:$0xff]  ;;  %vm1020_vm8 = vcmask 33792   ;;  %vm1034_vm9 = vcmask 58368  }
 0x710   :  { %v1136_v23 = vld [vmem:[%s1992_s24] ss:$0 sm:$0xff]  ;;  %s1623_s12 = smov [#allocation20]   ;;  %s1624_s9 = smov [#allocation24]  }
 0x711   :  { %s1042_s20 = sshll.u32 %s1623_s12, 4  ;;  %s1072_s19 = sshll.u32 %s1624_s9, 4  ;;  %s1043_s20 = int_to_ptr.vmem [resolvable:$true] %s1042_s20  ;;  %s1073_s19 = int_to_ptr.vmem [resolvable:$true] %s1072_s19 }
 0x712   :  { %s1546_s22 = scalar_lea.vmem %s1043_s20, 32  ;;  %p1551_p10 = scmp.lt.s32.totalorder %s1043_s20, %s1043_s20 }
 0x713   :  { %p1547_p9 = scmp.ne.s32.totalorder %s1043_s20, %s1546_s22  ;;  %p1552_p11 = scmp.lt.s32.totalorder %s1546_s22, %s1546_s22 }
 0x715   :  { %p1553_p12 = por %p1552_p11, %p1551_p10 }
 0x717   :  { %p1554_p13 = pnand %p1553_p12, %p1547_p9 }
 0x7be   :  { %v951_v24 = vpop.f32.mrf.mxu1  ;;  %v1014_v25 = vpop.f32.mrf.mxu0 }
 0x7bf   :  { %v952_v26 = vadd.f32 %v1132_v7, %v951_v24  ;;  %v1015_v17 = vadd.f32 %v1136_v23, %v1014_v25 }
 0x7c0   :  { %v1212_v27 = vpop.f32.mrf.mxu1  ;;  %v1220_v28 = vpop.f32.mrf.mxu0 }
 0x7c1   :  { %1021 = vst.msk [vmem:[#allocation20] sm:$0x3] %vm1020_vm8, %v1015_v17 }
 0x7c2   :  { %1035 = vst.msk [vmem:[#allocation24] sm:$0x3] %vm1034_vm9, %v952_v26  ;;  %v954_v29 = vpop.f32.mrf.mxu1  ;;  %v1017_v30 = vpop.f32.mrf.mxu0 }
 0x7c3   :  { %1557 = shalt.err (!%p1554_p13)
}
 0x7c4   :  { %1045 = dma.vmem_to_hbm [thread:$0]  %s1043_s20, 32, %s1993_s25, [#allocation4]  }
 0x7c5   :  { %s1566_s4 = scalar_lea.vmem %s1073_s19, 32  ;;  %p1571_p1 = scmp.lt.s32.totalorder %s1073_s19, %s1073_s19 }
 0x7c6   :  { %p1567_p0 = scmp.ne.s32.totalorder %s1073_s19, %s1566_s4  ;;  %p1572_p2 = scmp.lt.s32.totalorder %s1566_s4, %s1566_s4 }
 0x7c8   :  { %p1573_p3 = por %p1572_p2, %p1571_p1 }
 0x7ca   :  { %p1574_p4 = pnand %p1573_p3, %p1567_p0 }
 0x7cc   :  { %1577 = shalt.err (!%p1574_p4)
}
 0x7cd   :  { %1075 = dma.vmem_to_hbm [thread:$0]  %s1073_s19, 32, %s1996_s28, [#allocation25]   ;;  %v1213_v31 = vpop.f32.mrf.mxu1  ;;  %v1221_v32 = vpop.f32.mrf.mxu0 }
 0x7ce   :  { %1598 = dma.done.wait [#allocation4], 32  }
 0x7cf   :  { %1599 = vsyncadd [#allocation4], 4294967264 }
 0x7d0   :  { %1600 = dma.done.wait [#allocation22], 64  }
 0x7d1   :  { %1601 = vsyncadd [#allocation22], 4294967232 }
 0x7d2   :  { %1602 = dma.done.wait [#allocation25], 32  }
 0x7d3   :  { %1603 = vsyncadd [#allocation25], 4294967264 }
 0x7d4   :  { %1088 = vsyncpa [#allocation3], 1 }
 0x7d5   :  { %1089 = vsyncpa [#allocation6], 1 }
 0x7d6   :  { %1090 = vsyncpa [#allocation9], 1 }
 0x7d7   :  { %1091 = vsyncpa [#allocation12], 1 }
 0x7d8   :  { %1092 = vsyncpa [#allocation15], 1 }
 0x7d9   :  { %1093 = vsyncpa [#allocation18], 1 }
 0x7da   :  { %1094 = vsyncpa [#allocation4], 1 }
 0x7db   :  { %1095 = vsyncpa [#allocation22], 1 }
 0x7dc   :  { %1096 = vsyncpa [#allocation25], 1 }

</bundles_post_ra>
